<compile_context>
chip_gen: v6e
topology: v6e:2x2x1
jax: 0.10.0
libtpu: 0.0.40
codegen_flags: <defaults>
</compile_context>

<pallas_src>
import functools

import jax
import jax.numpy as jnp
from jax.experimental import pallas as pl
from jax.experimental.pallas import tpu as pltpu


def _round_up(x: int, m: int) -> int:
    return ((x + m - 1) // m) * m


# Sublane granularity for the batch tile: 16 is safe for both f32 (needs 8) and
# bf16 (needs 16) inputs.
_SUBLANE = 16


def dqn_mlp_kernel(x_ref, w1_ref, b1_ref, w2_ref, b2_ref, o_ref):
    # x_ref : [TB, K]     (f32 or bf16)
    # w1_ref: [K, Hp]     bf16 (H padded to 128, pad cols are zero)
    # b1_ref: [1, Hp]     f32  (pad entries zero -> tanh(0)=0)
    # w2_ref: [Hp, O]     bf16 (pad rows zero -> contribute nothing)
    # b2_ref: [1, O]      f32
    # o_ref : [TB, O]     f32
    x = x_ref[...].astype(w1_ref.dtype)                     # feed MXU at bf16 rate
    h = jnp.dot(x, w1_ref[...], preferred_element_type=jnp.float32)
    h = jnp.tanh(h + b1_ref[...])                           # f32 bias add + tanh
    # Dropout(p=0.1) is identity in eval/inference mode.
    o = jnp.dot(h.astype(w2_ref.dtype), w2_ref[...],
                preferred_element_type=jnp.float32)
    o_ref[...] = (o + b2_ref[...]).astype(o_ref.dtype)


def prepare_params(w1, b1, w2, b2):
    """Pad/cast the Linear params ONCE (hoisted out of the per-call path).

    Hidden dim is padded to 128 lanes; padded hidden units get bias 0 and zero
    w2 rows, so they contribute exactly nothing to the real outputs. K and the
    output dim (2) are left un-padded.
    """
    K, H = w1.shape
    O = w2.shape[1]
    Hp = _round_up(H, 128)
    w1p = jnp.zeros((K, Hp), jnp.bfloat16).at[:, :H].set(w1.astype(jnp.bfloat16))
    b1p = jnp.zeros((1, Hp), jnp.float32).at[:, :H].set(b1.astype(jnp.float32)[None, :])
    w2p = jnp.zeros((Hp, O), jnp.bfloat16).at[:H, :].set(w2.astype(jnp.bfloat16))
    b2p = b2.astype(jnp.float32)[None, :]
    return w1p, b1p, w2p, b2p


@functools.partial(jax.jit, static_argnames=("tile_b",))
def dqn_forward(x, params, tile_b: int = 256):
    """x: [B, K] (f32 or bf16) -> [B, 2] f32, matching the nn.Sequential above.

    For maximum HBM-bandwidth savings pass x already in bfloat16.
    tile_b: batch rows per grid step (multiple of 16; sweep 256-1024 for big B).
    """
    w1p, b1p, w2p, b2p = params
    B, K = x.shape
    Hp = w1p.shape[1]
    O = w2p.shape[1]

    # Clamp the batch tile to the (padded) batch; keep it a multiple of 16.
    tb = min(_round_up(tile_b, _SUBLANE), _round_up(B, _SUBLANE))
    Bp = _round_up(B, tb)
    if Bp != B:
        x = jnp.zeros((Bp, K), x.dtype).at[:B, :].set(x)

    grid = (Bp // tb,)
    out = pl.pallas_call(
        dqn_mlp_kernel,
        out_shape=jax.ShapeDtypeStruct((Bp, O), jnp.float32),
        grid_spec=pltpu.PrefetchScalarGridSpec(
            num_scalar_prefetch=0,
            grid=grid,
            in_specs=[
                # x tile over batch; minor dim = full K (allowed: equals array dim).
                pl.BlockSpec((tb, K), lambda i: (i, 0)),
                pl.BlockSpec((K, Hp), lambda i: (0, 0)),    # w1 (resident)
                pl.BlockSpec((1, Hp), lambda i: (0, 0)),    # b1
                pl.BlockSpec((Hp, O), lambda i: (0, 0)),    # w2
                pl.BlockSpec((1, O), lambda i: (0, 0)),     # b2
            ],
            # Output minor dim = full O (=2): no 128-lane padding, tiny writeback.
            out_specs=pl.BlockSpec((tb, O), lambda i: (i, 0)),
        ),
        compiler_params=pltpu.CompilerParams(
            # Multi-step batch grids shard across v7x's two TensorCores.
            dimension_semantics=("parallel",),
        ),
    )(x, w1p, b1p, w2p, b2p)

    return out[:B, :] if Bp != B else out


def init_params(key, num_feats: int, emb_dim: int):
    """Deterministic init mirroring the nn.Linear shapes (PyTorch-style uniform)."""
    k = num_feats + 2 * emb_dim          # input dim of the first Linear
    hidden, out = 20, 2
    k1, k2, k3, k4 = jax.random.split(key, 4)
    s1 = 1.0 / jnp.sqrt(k)
    s2 = 1.0 / jnp.sqrt(hidden)
    w1 = jax.random.uniform(k1, (k, hidden), jnp.float32, -s1, s1)
    b1 = jax.random.uniform(k2, (hidden,), jnp.float32, -s1, s1)
    w2 = jax.random.uniform(k3, (hidden, out), jnp.float32, -s2, s2)
    b2 = jax.random.uniform(k4, (out,), jnp.float32, -s2, s2)
    return w1, b1, w2, b2


def reference_forward(x, w1, b1, w2, b2):
    h = jnp.tanh(x.astype(jnp.float32) @ w1 + b1)
    return h @ w2 + b2


if __name__ == "__main__":
    key = jax.random.PRNGKey(0)
    k_params, k_x1, k_x2 = jax.random.split(key, 3)

    # Synthetic sizes consistent with the module:
    #   num_feats feature scalars + two aggregated entity embeddings concatenated.
    num_feats = 16
    emb_dim = 8          # embeddings_helper.dimensions()
    K = num_feats + 2 * emb_dim

    w1, b1, w2, b2 = init_params(k_params, num_feats, emb_dim)
    params = prepare_params(w1, b1, w2, b2)   # pad + bf16 cast once

    # Case 1: tiny inference batch (f32 input, single grid step, batch-pad path).
    batch = 8
    x = jax.random.normal(k_x1, (batch, K), jnp.float32)
    out = jax.block_until_ready(dqn_forward(x, params))
    ref = reference_forward(x, w1, b1, w2, b2)
    assert out.shape == (batch, 2), out.shape
    assert jnp.allclose(out, ref, atol=2.5e-2, rtol=2.5e-2), (out, ref)

    # Case 2: larger batch, bf16 input (bandwidth-optimal path), multi-step grid.
    batch2 = 64
    x2 = jax.random.normal(k_x2, (batch2, K), jnp.float32)
    out2 = jax.block_until_ready(dqn_forward(x2.astype(jnp.bfloat16), params, tile_b=16))
    ref2 = reference_forward(x2, w1, b1, w2, b2)
    assert out2.shape == (batch2, 2), out2.shape
    assert jnp.allclose(out2, ref2, atol=2.5e-2, rtol=2.5e-2), (out2, ref2)

    print("KERNEL_OK")
</pallas_src>

<mosaic_0001>
module attributes {stable_mosaic.version = 11 : i64} {
  func.func @dqn_mlp_kernel(%arg0: i32, %arg1: memref<16x32xf32, #tpu.memory_space<vmem>>, %arg2: memref<32x128xbf16, #tpu.memory_space<vmem>>, %arg3: memref<1x128xf32, #tpu.memory_space<vmem>>, %arg4: memref<128x2xbf16, #tpu.memory_space<vmem>>, %arg5: memref<1x2xf32, #tpu.memory_space<vmem>>, %arg6: memref<16x2xf32, #tpu.memory_space<vmem>>) attributes {dimension_semantics = [#tpu.dimension_semantics<parallel>], iteration_bounds = array<i64: 1>, scalar_prefetch = 0 : i64, scratch_operands = 0 : i64, tpu.core_type = #tpu.core_type<tc>, window_params = [{transform_indices = @transform_0, window_bounds = array<i64: 16, 32>}, {pipeline_mode = #tpu.pipeline_mode<synchronous>, transform_indices = @transform_1, window_bounds = array<i64: 32, 128>}, {pipeline_mode = #tpu.pipeline_mode<synchronous>, transform_indices = @transform_2, window_bounds = array<i64: 1, 128>}, {pipeline_mode = #tpu.pipeline_mode<synchronous>, transform_indices = @transform_3, window_bounds = array<i64: 128, 2>}, {pipeline_mode = #tpu.pipeline_mode<synchronous>, transform_indices = @transform_4, window_bounds = array<i64: 1, 2>}, {transform_indices = @transform_5, window_bounds = array<i64: 16, 2>}]} {
    %c0 = arith.constant 0 : index
    %c0_0 = arith.constant 0 : index
    %0 = vector.load %arg1[%c0, %c0_0] : memref<16x32xf32, #tpu.memory_space<vmem>>, vector<16x32xf32>
    %1 = arith.truncf %0 : vector<16x32xf32> to vector<16x32xbf16>
    %c0_1 = arith.constant 0 : index
    %c0_2 = arith.constant 0 : index
    %2 = vector.load %arg2[%c0_1, %c0_2] : memref<32x128xbf16, #tpu.memory_space<vmem>>, vector<32x128xbf16>
    %cst = arith.constant dense<0.000000e+00> : vector<16x128xf32>
    %3 = tpu.matmul %1, %2, %cst {dimension_numbers = #tpu.dot_dimension_numbers<[1], [0], [0], [1], [0, 0, 1, 1], [], []>} : vector<16x32xbf16>, vector<32x128xbf16>, vector<16x128xf32> -> vector<16x128xf32>
    %c0_3 = arith.constant 0 : index
    %c0_4 = arith.constant 0 : index
    %4 = vector.load %arg3[%c0_3, %c0_4] : memref<1x128xf32, #tpu.memory_space<vmem>>, vector<1x128xf32>
    %5 = vector.broadcast %4 : vector<1x128xf32> to vector<16x128xf32>
    %6 = arith.addf %3, %5 : vector<16x128xf32>
    %7 = math.tanh %6 : vector<16x128xf32>
    %8 = arith.truncf %7 : vector<16x128xf32> to vector<16x128xbf16>
    %c0_5 = arith.constant 0 : index
    %c0_6 = arith.constant 0 : index
    %9 = vector.load %arg4[%c0_5, %c0_6] : memref<128x2xbf16, #tpu.memory_space<vmem>>, vector<128x2xbf16>
    %cst_7 = arith.constant dense<0.000000e+00> : vector<16x2xf32>
    %10 = tpu.matmul %8, %9, %cst_7 {dimension_numbers = #tpu.dot_dimension_numbers<[1], [0], [0], [1], [0, 0, 1, 1], [], []>} : vector<16x128xbf16>, vector<128x2xbf16>, vector<16x2xf32> -> vector<16x2xf32>
    %c0_8 = arith.constant 0 : index
    %c0_9 = arith.constant 0 : index
    %11 = vector.load %arg5[%c0_8, %c0_9] : memref<1x2xf32, #tpu.memory_space<vmem>>, vector<1x2xf32>
    %12 = vector.broadcast %11 : vector<1x2xf32> to vector<16x2xf32>
    %13 = arith.addf %10, %12 : vector<16x2xf32>
    %c0_10 = arith.constant 0 : index
    %c0_11 = arith.constant 0 : index
    %14 = vector.load %arg6[%c0_10, %c0_11] : memref<16x2xf32, #tpu.memory_space<vmem>>, vector<16x2xf32>
    tpu.vector_store %arg6[%c0_10, %c0_11], %13 {strides = array<i32>} : memref<16x2xf32, #tpu.memory_space<vmem>>, vector<16x2xf32>,
    return
  }
  func.func @transform_0(%arg0: i32) -> (i32, i32) {
    %c0_i32 = arith.constant 0 : i32
    %c0_i32_0 = arith.constant 0 : i32
    return %arg0, %c0_i32 : i32, i32
  }
  func.func @transform_1(%arg0: i32) -> (i32, i32) {
    %c0_i32 = arith.constant 0 : i32
    %c0_i32_0 = arith.constant 0 : i32
    %c0_i32_1 = arith.constant 0 : i32
    return %c0_i32, %c0_i32_0 : i32, i32
  }
  func.func @transform_2(%arg0: i32) -> (i32, i32) {
    %c0_i32 = arith.constant 0 : i32
    %c0_i32_0 = arith.constant 0 : i32
    %c0_i32_1 = arith.constant 0 : i32
    return %c0_i32, %c0_i32_0 : i32, i32
  }
  func.func @transform_3(%arg0: i32) -> (i32, i32) {
    %c0_i32 = arith.constant 0 : i32
    %c0_i32_0 = arith.constant 0 : i32
    %c0_i32_1 = arith.constant 0 : i32
    return %c0_i32, %c0_i32_0 : i32, i32
  }
  func.func @transform_4(%arg0: i32) -> (i32, i32) {
    %c0_i32 = arith.constant 0 : i32
    %c0_i32_0 = arith.constant 0 : i32
    %c0_i32_1 = arith.constant 0 : i32
    return %c0_i32, %c0_i32_0 : i32, i32
  }
  func.func @transform_5(%arg0: i32) -> (i32, i32) {
    %c0_i32 = arith.constant 0 : i32
    %c0_i32_0 = arith.constant 0 : i32
    return %arg0, %c0_i32 : i32, i32
  }
}

</mosaic_0001>

<bundles_post_ra>
// kernel: dqn_forward.1
= control target key start
LH: loop header
LB: loop body
LE: loop exit
PB: predicated region body
PF: predicated region fallthrough
CT: control target
= control target key end

     0   :  { %v283_v0 = vmov 0.0   ;;  %vm284_vm0 = vmmov 0   ;;  %vm47_vm1 = vcmask 261120   ;;  %vm207_vm2 = vcmask 15360   ;;  %s363_s1 = inlined_call_operand.vmem [shape: bf16[32,128], index: 1, kind: input, shape index: {}]   ;;  %s364_s0 = inlined_call_operand.vmem [shape: f32[16,32], index: 0, kind: input, shape index: {}]   ;;  %s365_s3 = inlined_call_operand.vmem [shape: bf16[128,2], index: 3, kind: input, shape index: {}]   ;;  %s366_s2 = inlined_call_operand.vmem [shape: f32[1,128], index: 2, kind: input, shape index: {}]   ;;  %s367_s4 = inlined_call_operand.vmem [shape: f32[1,2], index: 4, kind: input, shape index: {}]   ;;  %s368_s5 = inlined_call_operand.vmem [shape: f32[16,2], index: 5, kind: output, shape index: {}]  }
   0x1   :  { %239 = vmatprep.subr.bf16.mxu0 %v283_v0  ;;  %v269_v1 = vld [vmem:[%s363_s1 + $0x8] sm:$0xff]   ;;  %243 = vmatprep.mubr.msk.bf16.mxu0 %vm284_vm0, %v283_v0  ;;  %v270_v2 = vld [vmem:[%s363_s1] sm:$0xff]   ;;  %v271_v5 = vld [vmem:[%s365_s3 + $0x38] sm:$0xff]  }
   0x2   :  { %247 = vmatprep.subr.bf16.mxu1 %v283_v0  ;;  %263 = vmatprep.mubr.msk.bf16.mxu1 %vm284_vm0, %v283_v0  ;;  %v21_v3 = vld [vmem:[%s364_s0] sm:$0xff]  ;;  %v22_v4 = vld [vmem:[%s364_s0 + $0x8] sm:$0xff]  ;;  %v272_v6 = vld [vmem:[%s365_s3 + $0x30] sm:$0xff]  }
   0x3   :  { %240 = vmatpush3.bf16.msra.mxu0 %v269_v1  ;;  %v23_v7 = vpack.c.bf16 %v22_v4, %v21_v3  ;;  %248 = vmatpush3.bf16.msra.mxu1 %v271_v5  ;;  %v273_v8 = vld [vmem:[%s365_s3 + $0x28] sm:$0xff]   ;;  %v274_v9 = vld [vmem:[%s365_s3 + $0x20] sm:$0xff]   ;;  %v275_v10 = vld [vmem:[%s365_s3 + $0x18] sm:$0xff]  }
   0x4   :  { %241 = vmatprep.subr.bf16.mxu0 %v283_v0  ;;  %249 = vmatprep.subr.bf16.mxu1 %v283_v0  ;;  %v276_v11 = vld [vmem:[%s365_s3 + $0x10] sm:$0xff]   ;;  %v277_v12 = vld [vmem:[%s365_s3 + $0x8] sm:$0xff]   ;;  %v278_v13 = vld [vmem:[%s365_s3] sm:$0xff]  }
   0x5   :  { %v214_v14 = vld [vmem:[%s366_s2] ss:$0 sm:$0xff] }
   0x6   :  { %v218_v24 = vld [vmem:[%s367_s4] ss:$0 sm:$0xff] }
   0x7   :  { %242 = vmatpush3.bf16.msra.mxu0 %v270_v2  ;;  %250 = vmatpush3.bf16.msra.mxu1 %v272_v6 }
   0x8   :  { %251 = vmatprep.subr.bf16.mxu1 %v283_v0 }
   0xa   :  { %244 = vmatmul.mubr.msk.bf16.vlgmr.msra.gmra.mxu0 %vm47_vm1, %v23_v7 }
   0xb   :  { %252 = vmatpush3.bf16.msra.mxu1 %v273_v8 }
   0xc   :  { %253 = vmatprep.subr.bf16.mxu1 %v283_v0 }
   0xf   :  { %254 = vmatpush3.bf16.msra.mxu1 %v274_v9 }
  0x10   :  { %255 = vmatprep.subr.bf16.mxu1 %v283_v0 }
  0x13   :  { %256 = vmatpush3.bf16.msra.mxu1 %v275_v10 }
  0x14   :  { %257 = vmatprep.subr.bf16.mxu1 %v283_v0 }
  0x17   :  { %258 = vmatpush3.bf16.msra.mxu1 %v276_v11 }
  0x18   :  { %259 = vmatprep.subr.bf16.mxu1 %v283_v0 }
  0x1b   :  { %260 = vmatpush3.bf16.msra.mxu1 %v277_v12 }
  0x1c   :  { %261 = vmatprep.subr.bf16.mxu1 %v283_v0 }
  0x1f   :  { %262 = vmatpush3.bf16.msra.mxu1 %v278_v13 }
  0xca   :  { %v85_v15 = vpop.f32.mrf.mxu0 }
  0xcb   :  { %v86_v16 = vadd.f32 %v214_v14, %v85_v15 }
  0xcc   :  { %v245_v17 = vpop.f32.mrf.mxu0 }
  0xcd   :  { %279 = vtanh.f32 %v86_v16 }
  0xce   :  { %v88_v18 = vpop.f32.mrf.mxu0 }
  0xcf   :  { %v89_v19 = vadd.f32 %v214_v14, %v88_v18 }
  0xd0   :  { %v246_v20 = vpop.f32.mrf.mxu0 }
  0xd1   :  { %281 = vtanh.f32 %v89_v19 }
  0xda   :  { %v280_v21 = vpop.eup %279 }
  0xde   :  { %v282_v22 = vpop.eup %281 }
  0xdf   :  { %v94_v23 = vpack.c.bf16 %v282_v22, %v280_v21 }
  0xe1   :  { %264 = vmatmul.mubr.bf16.vlgmr.msra.gmra.mxu1 %v94_v23 }
 0x1a1   :  { %v200_v25 = vpop.f32.mrf.mxu1 }
 0x1a2   :  { %v201_v26 = vadd.f32 %v218_v24, %v200_v25 }
 0x1a3   :  { %v265_v27 = vpop.f32.mrf.mxu1 }
 0x1a4   :  { %208 = vst.msk [vmem:[%s368_s5] sm:$0xff] %vm207_vm2, %v201_v26 }
 0x1a5   :  { %v203_v28 = vpop.f32.mrf.mxu1 }
 0x1a6   :  { %v204_v29 = vadd.f32 %v218_v24, %v203_v28 }
 0x1a7   :  { %v266_v30 = vpop.f32.mrf.mxu1 }
 0x1a8   :  { %209 = vst.msk [vmem:[%s368_s5 + $0x8] sm:$0xff] %vm207_vm2, %v204_v29 }

</bundles_post_ra>
